<compile_context>
chip_gen: v5e
topology: v5e:2x2
jax: 0.10.0
libtpu: 0.0.40
codegen_flags: <defaults>
</compile_context>

<pallas_src>
import jax
import jax.numpy as jnp
from jax.experimental import pallas as pl
from jax.experimental.pallas import tpu as pltpu

K = 5              # conv kernel width (both convs)
NEG_SLOPE = 0.01   # nn.LeakyReLU default negative_slope
BN_EPS = 1e-5


def _leaky_relu(x):
    return jnp.where(x > 0, x, NEG_SLOPE * x)


def conv_stack_kernel(x_ref, w1_ref, sh1_ref, w2_ref, sh2_ref, o_ref):
    # x_ref:   (R0, Cin)    bf16  NB batch elements flattened along time,
    #                             each zero-padded to Tp frames (R0 = NB*Tp)
    # w1_ref:  (K, Cin, C)  bf16  conv1 weights with BN1 scale folded in
    # sh1_ref: (1, C)       f32   conv1 bias + BN1 shift folded
    # w2_ref:  (K, C, C)    bf16  conv2 weights with BN2 scale folded in
    # sh2_ref: (1, C)       f32   conv2 bias + BN2 shift folded
    # o_ref:   (R0//4, 2C)  f32   two pooled frames packed per 128-lane row
    r0 = x_ref.shape[0]
    c = w1_ref.shape[2]
    r1 = r0 - (K - 1)
    r2 = r1 - (K - 1)

    # ---- Conv1d(40->64, k=5): 5 accumulated MXU matmuls (bf16 in, f32 acc) ----
    y1 = jnp.dot(x_ref[0:r1, :], w1_ref[0],
                 preferred_element_type=jnp.float32)
    for k in range(1, K):
        y1 = y1 + jnp.dot(x_ref[k:k + r1, :], w1_ref[k],
                          preferred_element_type=jnp.float32)
    y1 = _leaky_relu(y1 + sh1_ref[...])     # (r1, C) f32; Dropout = id (eval)
    y1b = y1.astype(jnp.bfloat16)           # conv2 operand in bf16

    # ---- Conv1d(64->64, k=5): 5 accumulated matmuls, no im2col buffer ----
    y2 = jnp.dot(y1b[0:r2, :], w2_ref[0],
                 preferred_element_type=jnp.float32)
    for k in range(1, K):
        y2 = y2 + jnp.dot(y1b[k:k + r2, :], w2_ref[k],
                          preferred_element_type=jnp.float32)
    y2 = _leaky_relu(y2 + sh2_ref[...])     # (r2, C) f32

    # ---- MaxPool1d(2,2) fused with lane-dense packing ----
    # Pad y2 back up to r0 rows (extra rows land in dropped output positions),
    # then row r of the packed output = [pooled[2r] ++ pooled[2r+1]] -> 128
    # lanes wide, unmasked stores.
    y2p = jnp.concatenate(
        [y2, jnp.zeros((2 * (K - 1), c), jnp.float32)], axis=0)   # (r0, C)
    y4 = y2p.reshape(r0 // 4, 4, c)
    p0 = jnp.maximum(y4[:, 0, :], y4[:, 1, :])     # pooled frame 2r
    p1 = jnp.maximum(y4[:, 2, :], y4[:, 3, :])     # pooled frame 2r+1
    o_ref[...] = jnp.concatenate([p0, p1], axis=-1).astype(o_ref.dtype)


def model_forward(x_nct, params):
    """x_nct: (B, 40, T) float32 (PyTorch NCW).  Returns (B, (T-8)//2, 64)."""
    B, Cin, T = x_nct.shape
    Cout = params['w1'].shape[2]
    T1 = T - (K - 1)
    T2 = T1 - (K - 1)
    T3 = T2 // 2
    assert T3 >= 1, "input sequence too short for the conv stack"

    # Batch-block NB elements per grid step, but keep the grid >= 2 steps so
    # v7x's two TensorCores both get work (v5e/v6e have a single TC).
    NB = 1
    for cand in (8, 4, 2):
        if B // 2 >= cand:
            NB = cand
            break
    G = pl.cdiv(B, NB)
    Bp = G * NB

    # Per-element time padding: multiple of 16 (bf16 sublane tile); bump to a
    # multiple of 32 when needed so the packed output rows per step are a
    # multiple of 8 (unmasked stores).  Padded frames are zeros and the pooled
    # frames they produce are dropped below -> kept frames are exact.
    Tp = 16 * pl.cdiv(T, 16)
    if (NB * Tp) % 32 != 0:
        Tp = 32 * pl.cdiv(T, 32)
    R0 = NB * Tp          # flattened rows per grid step
    P = R0 // 4           # packed (128-lane) output rows per grid step

    # Channels-last, pad batch/time, flatten NB elements per step along time
    # (conv rows that straddle element boundaries only feed dropped outputs),
    # and cast the dominant HBM stream to bf16.
    x_btc = jnp.transpose(x_nct, (0, 2, 1)).astype(jnp.float32)   # (B, T, Cin)
    x_btc = jnp.pad(x_btc, ((0, Bp - B), (0, Tp - T), (0, 0)))
    x_flat = x_btc.reshape(G, R0, Cin).astype(jnp.bfloat16)

    # Fold conv bias + eval-mode BatchNorm into the weights and a single shift.
    s1 = params['bn1_gamma'] * jax.lax.rsqrt(params['bn1_var'] + BN_EPS)
    s2 = params['bn2_gamma'] * jax.lax.rsqrt(params['bn2_var'] + BN_EPS)
    w1 = (params['w1'] * s1).astype(jnp.bfloat16)          # (K, Cin, Cout)
    w2 = (params['w2'] * s2).astype(jnp.bfloat16)          # (K, Cout, Cout)
    sh1 = ((params['b1'] - params['bn1_mean']) * s1
           + params['bn1_beta']).reshape(1, Cout).astype(jnp.float32)
    sh2 = ((params['b2'] - params['bn2_mean']) * s2
           + params['bn2_beta']).reshape(1, Cout).astype(jnp.float32)

    out_packed = pl.pallas_call(
        conv_stack_kernel,
        out_shape=jax.ShapeDtypeStruct((G, P, 2 * Cout), jnp.float32),
        grid=(G,),
        in_specs=[
            pl.BlockSpec((None, R0, Cin), lambda g: (g, 0, 0)),
            pl.BlockSpec((K, Cin, Cout), lambda g: (0, 0, 0)),
            pl.BlockSpec((1, Cout), lambda g: (0, 0)),
            pl.BlockSpec((K, Cout, Cout), lambda g: (0, 0, 0)),
            pl.BlockSpec((1, Cout), lambda g: (0, 0)),
        ],
        out_specs=pl.BlockSpec((None, P, 2 * Cout), lambda g: (g, 0, 0)),
        compiler_params=pltpu.CompilerParams(
            dimension_semantics=("parallel",)),
    )(x_flat, w1, sh1, w2, sh2)

    # Unpack the two-frames-per-row layout (pure metadata reshapes) and drop
    # padded batch rows / pooled frames that came from the zero padding.
    out = out_packed.reshape(Bp, Tp // 4, 2, Cout).reshape(Bp, Tp // 2, Cout)
    return out[:B, :T3, :]      # == PyTorch self.conv(x).permute(0, 2, 1)


def init_params(key, cin=40, cout=64):
    ks = jax.random.split(key, 4)
    bound1 = 1.0 / float((cin * K) ** 0.5)
    bound2 = 1.0 / float((cout * K) ** 0.5)
    # Conv weights stored as (K, Cin, Cout): transpose of PyTorch (Cout, Cin, K);
    # a real checkpoint must be loaded with w.transpose(2, 1, 0).
    w1 = jax.random.uniform(ks[0], (K, cin, cout), jnp.float32, -bound1, bound1)
    b1 = jax.random.uniform(ks[1], (cout,), jnp.float32, -bound1, bound1)
    w2 = jax.random.uniform(ks[2], (K, cout, cout), jnp.float32, -bound2, bound2)
    b2 = jax.random.uniform(ks[3], (cout,), jnp.float32, -bound2, bound2)
    return dict(
        w1=w1, b1=b1, w2=w2, b2=b2,
        bn1_gamma=jnp.ones((cout,), jnp.float32),
        bn1_beta=jnp.zeros((cout,), jnp.float32),
        bn1_mean=jnp.zeros((cout,), jnp.float32),
        bn1_var=jnp.ones((cout,), jnp.float32),
        bn2_gamma=jnp.ones((cout,), jnp.float32),
        bn2_beta=jnp.zeros((cout,), jnp.float32),
        bn2_mean=jnp.zeros((cout,), jnp.float32),
        bn2_var=jnp.ones((cout,), jnp.float32),
    )


if __name__ == "__main__":
    key = jax.random.PRNGKey(0)
    kx, kp = jax.random.split(key)

    B, Cin, T = 2, 40, 32          # (batch, MFCC channels, time frames)
    x = jax.random.normal(kx, (B, Cin, T), jnp.float32)
    params = init_params(kp, cin=Cin, cout=64)

    fwd = jax.jit(model_forward)
    out = fwd(x, params)
    out = jax.block_until_ready(out)

    expected = (B, (T - 2 * (K - 1)) // 2, 64)   # (2, 12, 64)
    assert out.shape == expected, (out.shape, expected)
    assert bool(jnp.isfinite(out).all())
    print("KERNEL_OK")
</pallas_src>

<mosaic_0001>
module attributes {stable_mosaic.version = 11 : i64} {
  func.func @conv_stack_kernel(%arg0: i32, %arg1: memref<1x32x40xbf16, #tpu.memory_space<vmem>>, %arg2: memref<5x40x64xbf16, #tpu.memory_space<vmem>>, %arg3: memref<1x64xf32, #tpu.memory_space<vmem>>, %arg4: memref<5x64x64xbf16, #tpu.memory_space<vmem>>, %arg5: memref<1x64xf32, #tpu.memory_space<vmem>>, %arg6: memref<1x8x128xf32, #tpu.memory_space<vmem>>) attributes {dimension_semantics = [#tpu.dimension_semantics<parallel>], iteration_bounds = array<i64: 2>, scalar_prefetch = 0 : i64, scratch_operands = 0 : i64, tpu.core_type = #tpu.core_type<tc>, window_params = [{transform_indices = @transform_0, window_bounds = array<i64: 1, 32, 40>}, {pipeline_mode = #tpu.pipeline_mode<synchronous>, transform_indices = @transform_1, window_bounds = array<i64: 5, 40, 64>}, {pipeline_mode = #tpu.pipeline_mode<synchronous>, transform_indices = @transform_2, window_bounds = array<i64: 1, 64>}, {pipeline_mode = #tpu.pipeline_mode<synchronous>, transform_indices = @transform_3, window_bounds = array<i64: 5, 64, 64>}, {pipeline_mode = #tpu.pipeline_mode<synchronous>, transform_indices = @transform_4, window_bounds = array<i64: 1, 64>}, {transform_indices = @transform_5, window_bounds = array<i64: 1, 8, 128>}]} {
    %c0 = arith.constant 0 : index
    %c0_0 = arith.constant 0 : index
    %c0_1 = arith.constant 0 : index
    %0 = vector.load %arg1[%c0, %c0_0, %c0_1] : memref<1x32x40xbf16, #tpu.memory_space<vmem>>, vector<1x28x40xbf16>
    %1 = vector.shape_cast %0 : vector<1x28x40xbf16> to vector<28x40xbf16>
    %c0_2 = arith.constant 0 : index
    %c0_3 = arith.constant 0 : index
    %c0_4 = arith.constant 0 : index
    %2 = vector.load %arg2[%c0_2, %c0_3, %c0_4] : memref<5x40x64xbf16, #tpu.memory_space<vmem>>, vector<1x40x64xbf16>
    %3 = vector.shape_cast %2 : vector<1x40x64xbf16> to vector<40x64xbf16>
    %cst = arith.constant dense<0.000000e+00> : vector<28x64xf32>
    %4 = tpu.matmul %1, %3, %cst {dimension_numbers = #tpu.dot_dimension_numbers<[1], [0], [0], [1], [0, 0, 1, 1], [], []>} : vector<28x40xbf16>, vector<40x64xbf16>, vector<28x64xf32> -> vector<28x64xf32>
    %c0_5 = arith.constant 0 : index
    %c1 = arith.constant 1 : index
    %c0_6 = arith.constant 0 : index
    %5 = vector.load %arg1[%c0_5, %c1, %c0_6] : memref<1x32x40xbf16, #tpu.memory_space<vmem>>, vector<1x28x40xbf16>
    %6 = vector.shape_cast %5 : vector<1x28x40xbf16> to vector<28x40xbf16>
    %c1_7 = arith.constant 1 : index
    %c0_8 = arith.constant 0 : index
    %c0_9 = arith.constant 0 : index
    %7 = vector.load %arg2[%c1_7, %c0_8, %c0_9] : memref<5x40x64xbf16, #tpu.memory_space<vmem>>, vector<1x40x64xbf16>
    %8 = vector.shape_cast %7 : vector<1x40x64xbf16> to vector<40x64xbf16>
    %cst_10 = arith.constant dense<0.000000e+00> : vector<28x64xf32>
    %9 = tpu.matmul %6, %8, %cst_10 {dimension_numbers = #tpu.dot_dimension_numbers<[1], [0], [0], [1], [0, 0, 1, 1], [], []>} : vector<28x40xbf16>, vector<40x64xbf16>, vector<28x64xf32> -> vector<28x64xf32>
    %10 = arith.addf %4, %9 : vector<28x64xf32>
    %c0_11 = arith.constant 0 : index
    %c2 = arith.constant 2 : index
    %c0_12 = arith.constant 0 : index
    %11 = vector.load %arg1[%c0_11, %c2, %c0_12] : memref<1x32x40xbf16, #tpu.memory_space<vmem>>, vector<1x28x40xbf16>
    %12 = vector.shape_cast %11 : vector<1x28x40xbf16> to vector<28x40xbf16>
    %c2_13 = arith.constant 2 : index
    %c0_14 = arith.constant 0 : index
    %c0_15 = arith.constant 0 : index
    %13 = vector.load %arg2[%c2_13, %c0_14, %c0_15] : memref<5x40x64xbf16, #tpu.memory_space<vmem>>, vector<1x40x64xbf16>
    %14 = vector.shape_cast %13 : vector<1x40x64xbf16> to vector<40x64xbf16>
    %cst_16 = arith.constant dense<0.000000e+00> : vector<28x64xf32>
    %15 = tpu.matmul %12, %14, %cst_16 {dimension_numbers = #tpu.dot_dimension_numbers<[1], [0], [0], [1], [0, 0, 1, 1], [], []>} : vector<28x40xbf16>, vector<40x64xbf16>, vector<28x64xf32> -> vector<28x64xf32>
    %16 = arith.addf %10, %15 : vector<28x64xf32>
    %c0_17 = arith.constant 0 : index
    %c3 = arith.constant 3 : index
    %c0_18 = arith.constant 0 : index
    %17 = vector.load %arg1[%c0_17, %c3, %c0_18] : memref<1x32x40xbf16, #tpu.memory_space<vmem>>, vector<1x28x40xbf16>
    %18 = vector.shape_cast %17 : vector<1x28x40xbf16> to vector<28x40xbf16>
    %c3_19 = arith.constant 3 : index
    %c0_20 = arith.constant 0 : index
    %c0_21 = arith.constant 0 : index
    %19 = vector.load %arg2[%c3_19, %c0_20, %c0_21] : memref<5x40x64xbf16, #tpu.memory_space<vmem>>, vector<1x40x64xbf16>
    %20 = vector.shape_cast %19 : vector<1x40x64xbf16> to vector<40x64xbf16>
    %cst_22 = arith.constant dense<0.000000e+00> : vector<28x64xf32>
    %21 = tpu.matmul %18, %20, %cst_22 {dimension_numbers = #tpu.dot_dimension_numbers<[1], [0], [0], [1], [0, 0, 1, 1], [], []>} : vector<28x40xbf16>, vector<40x64xbf16>, vector<28x64xf32> -> vector<28x64xf32>
    %22 = arith.addf %16, %21 : vector<28x64xf32>
    %c0_23 = arith.constant 0 : index
    %c4 = arith.constant 4 : index
    %c0_24 = arith.constant 0 : index
    %23 = vector.load %arg1[%c0_23, %c4, %c0_24] : memref<1x32x40xbf16, #tpu.memory_space<vmem>>, vector<1x28x40xbf16>
    %24 = vector.shape_cast %23 : vector<1x28x40xbf16> to vector<28x40xbf16>
    %c4_25 = arith.constant 4 : index
    %c0_26 = arith.constant 0 : index
    %c0_27 = arith.constant 0 : index
    %25 = vector.load %arg2[%c4_25, %c0_26, %c0_27] : memref<5x40x64xbf16, #tpu.memory_space<vmem>>, vector<1x40x64xbf16>
    %26 = vector.shape_cast %25 : vector<1x40x64xbf16> to vector<40x64xbf16>
    %cst_28 = arith.constant dense<0.000000e+00> : vector<28x64xf32>
    %27 = tpu.matmul %24, %26, %cst_28 {dimension_numbers = #tpu.dot_dimension_numbers<[1], [0], [0], [1], [0, 0, 1, 1], [], []>} : vector<28x40xbf16>, vector<40x64xbf16>, vector<28x64xf32> -> vector<28x64xf32>
    %28 = arith.addf %22, %27 : vector<28x64xf32>
    %c0_29 = arith.constant 0 : index
    %c0_30 = arith.constant 0 : index
    %29 = vector.load %arg3[%c0_29, %c0_30] : memref<1x64xf32, #tpu.memory_space<vmem>>, vector<1x64xf32>
    %30 = vector.broadcast %29 : vector<1x64xf32> to vector<28x64xf32>
    %31 = arith.addf %28, %30 : vector<28x64xf32>
    %cst_31 = arith.constant 0.000000e+00 : f32
    %32 = vector.broadcast %cst_31 : f32 to vector<28x64xf32>
    %33 = arith.cmpf ogt, %31, %32 : vector<28x64xf32>
    %cst_32 = arith.constant 0.00999999977 : f32
    %34 = vector.broadcast %cst_32 : f32 to vector<28x64xf32>
    %35 = arith.mulf %34, %31 : vector<28x64xf32>
    %36 = arith.select %33, %31, %35 : vector<28x64xi1>, vector<28x64xf32>
    %37 = arith.truncf %36 : vector<28x64xf32> to vector<28x64xbf16>
    %38 = vector.extract_strided_slice %37 {offsets = [0, 0], sizes = [24, 64], strides = [1, 1]} : vector<28x64xbf16> to vector<24x64xbf16>
    %c0_33 = arith.constant 0 : index
    %c0_34 = arith.constant 0 : index
    %c0_35 = arith.constant 0 : index
    %39 = vector.load %arg4[%c0_33, %c0_34, %c0_35] : memref<5x64x64xbf16, #tpu.memory_space<vmem>>, vector<1x64x64xbf16>
    %40 = vector.shape_cast %39 : vector<1x64x64xbf16> to vector<64x64xbf16>
    %cst_36 = arith.constant dense<0.000000e+00> : vector<24x64xf32>
    %41 = tpu.matmul %38, %40, %cst_36 {dimension_numbers = #tpu.dot_dimension_numbers<[1], [0], [0], [1], [0, 0, 1, 1], [], []>} : vector<24x64xbf16>, vector<64x64xbf16>, vector<24x64xf32> -> vector<24x64xf32>
    %42 = vector.extract_strided_slice %37 {offsets = [1, 0], sizes = [24, 64], strides = [1, 1]} : vector<28x64xbf16> to vector<24x64xbf16>
    %c1_37 = arith.constant 1 : index
    %c0_38 = arith.constant 0 : index
    %c0_39 = arith.constant 0 : index
    %43 = vector.load %arg4[%c1_37, %c0_38, %c0_39] : memref<5x64x64xbf16, #tpu.memory_space<vmem>>, vector<1x64x64xbf16>
    %44 = vector.shape_cast %43 : vector<1x64x64xbf16> to vector<64x64xbf16>
    %cst_40 = arith.constant dense<0.000000e+00> : vector<24x64xf32>
    %45 = tpu.matmul %42, %44, %cst_40 {dimension_numbers = #tpu.dot_dimension_numbers<[1], [0], [0], [1], [0, 0, 1, 1], [], []>} : vector<24x64xbf16>, vector<64x64xbf16>, vector<24x64xf32> -> vector<24x64xf32>
    %46 = arith.addf %41, %45 : vector<24x64xf32>
    %47 = vector.extract_strided_slice %37 {offsets = [2, 0], sizes = [24, 64], strides = [1, 1]} : vector<28x64xbf16> to vector<24x64xbf16>
    %c2_41 = arith.constant 2 : index
    %c0_42 = arith.constant 0 : index
    %c0_43 = arith.constant 0 : index
    %48 = vector.load %arg4[%c2_41, %c0_42, %c0_43] : memref<5x64x64xbf16, #tpu.memory_space<vmem>>, vector<1x64x64xbf16>
    %49 = vector.shape_cast %48 : vector<1x64x64xbf16> to vector<64x64xbf16>
    %cst_44 = arith.constant dense<0.000000e+00> : vector<24x64xf32>
    %50 = tpu.matmul %47, %49, %cst_44 {dimension_numbers = #tpu.dot_dimension_numbers<[1], [0], [0], [1], [0, 0, 1, 1], [], []>} : vector<24x64xbf16>, vector<64x64xbf16>, vector<24x64xf32> -> vector<24x64xf32>
    %51 = arith.addf %46, %50 : vector<24x64xf32>
    %52 = vector.extract_strided_slice %37 {offsets = [3, 0], sizes = [24, 64], strides = [1, 1]} : vector<28x64xbf16> to vector<24x64xbf16>
    %c3_45 = arith.constant 3 : index
    %c0_46 = arith.constant 0 : index
    %c0_47 = arith.constant 0 : index
    %53 = vector.load %arg4[%c3_45, %c0_46, %c0_47] : memref<5x64x64xbf16, #tpu.memory_space<vmem>>, vector<1x64x64xbf16>
    %54 = vector.shape_cast %53 : vector<1x64x64xbf16> to vector<64x64xbf16>
    %cst_48 = arith.constant dense<0.000000e+00> : vector<24x64xf32>
    %55 = tpu.matmul %52, %54, %cst_48 {dimension_numbers = #tpu.dot_dimension_numbers<[1], [0], [0], [1], [0, 0, 1, 1], [], []>} : vector<24x64xbf16>, vector<64x64xbf16>, vector<24x64xf32> -> vector<24x64xf32>
    %56 = arith.addf %51, %55 : vector<24x64xf32>
    %57 = vector.extract_strided_slice %37 {offsets = [4, 0], sizes = [24, 64], strides = [1, 1]} : vector<28x64xbf16> to vector<24x64xbf16>
    %c4_49 = arith.constant 4 : index
    %c0_50 = arith.constant 0 : index
    %c0_51 = arith.constant 0 : index
    %58 = vector.load %arg4[%c4_49, %c0_50, %c0_51] : memref<5x64x64xbf16, #tpu.memory_space<vmem>>, vector<1x64x64xbf16>
    %59 = vector.shape_cast %58 : vector<1x64x64xbf16> to vector<64x64xbf16>
    %cst_52 = arith.constant dense<0.000000e+00> : vector<24x64xf32>
    %60 = tpu.matmul %57, %59, %cst_52 {dimension_numbers = #tpu.dot_dimension_numbers<[1], [0], [0], [1], [0, 0, 1, 1], [], []>} : vector<24x64xbf16>, vector<64x64xbf16>, vector<24x64xf32> -> vector<24x64xf32>
    %61 = arith.addf %56, %60 : vector<24x64xf32>
    %c0_53 = arith.constant 0 : index
    %c0_54 = arith.constant 0 : index
    %62 = vector.load %arg5[%c0_53, %c0_54] : memref<1x64xf32, #tpu.memory_space<vmem>>, vector<1x64xf32>
    %63 = vector.broadcast %62 : vector<1x64xf32> to vector<24x64xf32>
    %64 = arith.addf %61, %63 : vector<24x64xf32>
    %cst_55 = arith.constant 0.000000e+00 : f32
    %65 = vector.broadcast %cst_55 : f32 to vector<24x64xf32>
    %66 = arith.cmpf ogt, %64, %65 : vector<24x64xf32>
    %cst_56 = arith.constant 0.00999999977 : f32
    %67 = vector.broadcast %cst_56 : f32 to vector<24x64xf32>
    %68 = arith.mulf %67, %64 : vector<24x64xf32>
    %69 = arith.select %66, %64, %68 : vector<24x64xi1>, vector<24x64xf32>
    %cst_57 = arith.constant 0.000000e+00 : f32
    %70 = vector.broadcast %cst_57 : f32 to vector<8x64xf32>
    %71 = tpu.concatenate %69, %70 in 0 : vector<24x64xf32>, vector<8x64xf32> -> vector<32x64xf32>
    %72 = vector.shape_cast %71 : vector<32x64xf32> to vector<8x4x64xf32>
    %73 = vector.extract_strided_slice %72 {offsets = [0, 0, 0], sizes = [8, 1, 64], strides = [1, 1, 1]} : vector<8x4x64xf32> to vector<8x1x64xf32>
    %74 = vector.shape_cast %73 : vector<8x1x64xf32> to vector<8x64xf32>
    %75 = vector.extract_strided_slice %72 {offsets = [0, 1, 0], sizes = [8, 1, 64], strides = [1, 1, 1]} : vector<8x4x64xf32> to vector<8x1x64xf32>
    %76 = vector.shape_cast %75 : vector<8x1x64xf32> to vector<8x64xf32>
    %77 = arith.maximumf %74, %76 : vector<8x64xf32>
    %78 = vector.extract_strided_slice %72 {offsets = [0, 2, 0], sizes = [8, 1, 64], strides = [1, 1, 1]} : vector<8x4x64xf32> to vector<8x1x64xf32>
    %79 = vector.shape_cast %78 : vector<8x1x64xf32> to vector<8x64xf32>
    %80 = vector.extract_strided_slice %72 {offsets = [0, 3, 0], sizes = [8, 1, 64], strides = [1, 1, 1]} : vector<8x4x64xf32> to vector<8x1x64xf32>
    %81 = vector.shape_cast %80 : vector<8x1x64xf32> to vector<8x64xf32>
    %82 = arith.maximumf %79, %81 : vector<8x64xf32>
    %83 = tpu.concatenate %77, %82 in 1 : vector<8x64xf32>, vector<8x64xf32> -> vector<8x128xf32>
    %c0_58 = arith.constant 0 : index
    %c0_59 = arith.constant 0 : index
    %c0_60 = arith.constant 0 : index
    %84 = vector.load %arg6[%c0_58, %c0_59, %c0_60] : memref<1x8x128xf32, #tpu.memory_space<vmem>>, vector<1x8x128xf32>
    %85 = vector.shape_cast %84 : vector<1x8x128xf32> to vector<8x128xf32>
    %86 = vector.shape_cast %83 : vector<8x128xf32> to vector<1x8x128xf32>
    tpu.vector_store %arg6[%c0_58, %c0_59, %c0_60], %86 {strides = array<i32>} : memref<1x8x128xf32, #tpu.memory_space<vmem>>, vector<1x8x128xf32>,
    return
  }
  func.func @transform_0(%arg0: i32) -> (i32, i32, i32) {
    %c0_i32 = arith.constant 0 : i32
    %c0_i32_0 = arith.constant 0 : i32
    %c0_i32_1 = arith.constant 0 : i32
    return %arg0, %c0_i32, %c0_i32_0 : i32, i32, i32
  }
  func.func @transform_1(%arg0: i32) -> (i32, i32, i32) {
    %c0_i32 = arith.constant 0 : i32
    %c0_i32_0 = arith.constant 0 : i32
    %c0_i32_1 = arith.constant 0 : i32
    %c0_i32_2 = arith.constant 0 : i32
    return %c0_i32, %c0_i32_0, %c0_i32_1 : i32, i32, i32
  }
  func.func @transform_2(%arg0: i32) -> (i32, i32) {
    %c0_i32 = arith.constant 0 : i32
    %c0_i32_0 = arith.constant 0 : i32
    %c0_i32_1 = arith.constant 0 : i32
    return %c0_i32, %c0_i32_0 : i32, i32
  }
  func.func @transform_3(%arg0: i32) -> (i32, i32, i32) {
    %c0_i32 = arith.constant 0 : i32
    %c0_i32_0 = arith.constant 0 : i32
    %c0_i32_1 = arith.constant 0 : i32
    %c0_i32_2 = arith.constant 0 : i32
    return %c0_i32, %c0_i32_0, %c0_i32_1 : i32, i32, i32
  }
  func.func @transform_4(%arg0: i32) -> (i32, i32) {
    %c0_i32 = arith.constant 0 : i32
    %c0_i32_0 = arith.constant 0 : i32
    %c0_i32_1 = arith.constant 0 : i32
    return %c0_i32, %c0_i32_0 : i32, i32
  }
  func.func @transform_5(%arg0: i32) -> (i32, i32, i32) {
    %c0_i32 = arith.constant 0 : i32
    %c0_i32_0 = arith.constant 0 : i32
    %c0_i32_1 = arith.constant 0 : i32
    return %arg0, %c0_i32, %c0_i32_0 : i32, i32, i32
  }
}

</mosaic_0001>

<bundles_post_ra>
// kernel: model_forward.1
= control target key start
LH: loop header
LB: loop body
LE: loop exit
PB: predicated region body
PF: predicated region fallthrough
CT: control target
= control target key end

     0   :  { %s1376_s18 = smov 0   ;;  %s1583_s0 = inlined_call_operand.vmem [shape: bf16[2,32,40], index: 0, kind: input, shape index: {}]   ;;  %s1584_s1 = inlined_call_operand.vmem [shape: bf16[5,40,64], index: 1, kind: input, shape index: {}]   ;;  %s1585_s2 = inlined_call_operand.vmem [shape: f32[1,64], index: 2, kind: input, shape index: {}]   ;;  %s1586_s3 = inlined_call_operand.vmem [shape: bf16[5,64,64], index: 3, kind: input, shape index: {}]   ;;  %s1587_s4 = inlined_call_operand.vmem [shape: f32[1,64], index: 4, kind: input, shape index: {}]   ;;  %s1588_s5 = inlined_call_operand.vmem [shape: f32[2,8,128], index: 5, kind: output, shape index: {}]  }
   0x1 LB: > { %s1073_s19 = sadd.s32 4294967295, %s1342_s18   ;;  %p1077_p0 = scmp.ge.s32.totalorder %s1342_s18, 1  ;;  %s1342_s18 = sphi %s1376_s18, %s15_s18  }
   0x2   : > { %p187_p1 = scmp.lt.s32.totalorder %s1342_s18, 3 }
   0x4   : > { %p188_p2 = pnand %p1077_p0, %p187_p1 }
   0x5   : > { %p214_p3 = scmp.lt.s32.totalorder (!%p188_p2), %s1073_s19, 1  ;;  %s1345_s29 = smov (!%p188_p2), 64  }
   0x6   : > { %191 = sbr.rel (%p188_p2) target bundleno = 531 (0x213), region = 40 }
   0xb   : > { %v1085_v0 = vld [vmem:[%s1584_s1 + $0x24] sm:$0xf]  ;;  %v232_v1 = vld [vmem:[%s1584_s1 + $0x10] sm:$0xf]  ;;  %vm288_vm0 = vcmask 1043456   ;;  %s1590_s19 = smov (!%p214_p3, %s1073_s19), 1 }
   0xc   : > { %v275_v2 = vunpack.c.l.b16 %v1085_v0  ;;  %v323_v3 = vunpack.c.l.b16 %v232_v1  ;;  %v1110_v4 = vld [vmem:[%s1584_s1 + $0x38] sm:$0xf]  ;;  %v1125_v5 = vld [vmem:[%s1584_s1 + $0x4c] sm:$0xf]  ;;  %v1140_v8 = vld [vmem:[%s1584_s1 + $0x60] sm:$0xf] }
   0xd   : > { %v379_v9 = vunpack.c.l.b16 %v1110_v4  ;;  %v454_v10 = vunpack.c.l.b16 %v1125_v5  ;;  %s1283_s30 = sshll.u32 %s1590_s19, 4  ;;  %v515_v13 = vunpack.c.l.b16 %v1140_v8  ;;  %v1287_v14 = vld [vmem:[%s1584_s1 + $0x1c] sm:$0xff]  ;;  %v1285_v15 = vld [vmem:[%s1584_s1 + $0x8] sm:$0xff]  ;;  %v1286_v29 = vld [vmem:[%s1584_s1 + $0x14] sm:$0xff]  ;;  %vm281_vm1 = vcmask 326656  }
   0xe   : > { %v278_v6 = vpack.c.b16 %v275_v2, %v275_v2  ;;  %v326_v7 = vpack.c.b16 %v323_v3, %v323_v3  ;;  %s1413_s12 = scalar_lea.vmem %s1583_s0, %s1283_s30  ;;  %v1284_v30 = vld [vmem:[%s1584_s1] sm:$0xff]  ;;  %vm250_vm2 = vsmask.f32 7424  ;;  %v1289_v46 = vld [vmem:[%s1584_s1 + $0x30] sm:$0xff]  ;;  %v1293_v49 = vld [vmem:[%s1584_s1 + $0x58] sm:$0xff]  ;;  %vm366_vm4 = vcmask 1046528  }
   0xf   : > { %v1416_v16 = vld [vmem:[%s1413_s12 + $0x8] sm:$0xff]   ;;  %v382_v21 = vpack.c.b16 %v379_v9, %v379_v9  ;;  %v1315_v22 = vld [vmem:[%s1413_s12] sm:$0xff]   ;;  %v457_v23 = vpack.c.b16 %v454_v10, %v454_v10  ;;  %v518_v28 = vpack.c.b16 %v515_v13, %v515_v13  ;;  %v1292_v57 = vld [vmem:[%s1584_s1 + $0x50] sm:$0xff]  ;;  %vm427_vm3 = vsmask.f32 6400  ;;  %s1080_s30 = sshll.u32 %s1590_s19, 3 }
  0x10   : > { %v290_v11 = vsel %vm288_vm0, %v278_v6, 0  ;;  %v335_v12 = vsel %vm288_vm0, %v326_v7, 0  ;;  %v233_v17 = vld [vmem:[%s1413_s12 + $0xc] sm:$0x7]  ;;  %v246_v19 = vunpack.c.l.b16 %v1416_v16  ;;  %v356_v24 = vld [vmem:[%s1413_s12] sm:$0xe]  ;;  %v1317_v32 = vunpack.c.h.b16 %v1315_v22  ;;  %s222_s8 = scalar_lea.vmem %s1588_s5, %s1080_s30 }
  0x11   : > { %1318 = vmatpush.bf16.msra.mxu2 %v290_v11  ;;  %1321 = vmatpush.bf16.msra.mxu3 %v335_v12  ;;  %v227_v18 = vld [vmem:[%s1413_s12 + $0xc] sm:$0x3]  ;;  %v247_v20 = vunpack.c.l.b16 %v233_v17  ;;  %v252_v26 = vshrl.u32 %v1315_v22, 16  ;;  %v254_v27 = vshll.u32 %v1315_v22, 16  ;;  %v364_v33 = vunpack.c.l.b16 %v356_v24  ;;  %v1291_v47 = vld [vmem:[%s1584_s1 + $0x44] sm:$0xff]  ;;  %v1290_v56 = vld [vmem:[%s1584_s1 + $0x3c] sm:$0xff] }
  0x12   : > { %297 = vmatpush.bf16.msra.mxu0 %v290_v11  ;;  %342 = vmatpush.bf16.msra.mxu1 %v335_v12  ;;  %v312_v25 = vunpack.c.l.b16 %v227_v18  ;;  %v392_v38 = vsel %vm288_vm0, %v382_v21, 0  ;;  %v467_v40 = vsel %vm288_vm0, %v457_v23, 0  ;;  %v528_v42 = vsel %vm288_vm0, %v518_v28, 0  ;;  %v492_v48 = vld [vmem:[%s1413_s12] sm:$0xc]  ;;  %v1288_v55 = vld [vmem:[%s1584_s1 + $0x28] sm:$0xff] }
  0x13   : > { %v1429_v31 = vpack.c.b16 %v247_v20, %v246_v19  ;;  %v256_v34 = vrot.slane %v254_v27, 1  ;;  %v365_v43 = vpack.c.b16 %v1317_v32, %v364_v33  ;;  %v437_v52 = vshrl.u32 %v1416_v16, 16  ;;  %v1297_v8 = vld [vmem:[%s1586_s3 + $0x18] sm:$0xff]  ;;  %v1296_v10 = vld [vmem:[%s1586_s3 + $0x10] sm:$0xff]  ;;  %v1295_v13 = vld [vmem:[%s1586_s3 + $0x8] sm:$0xff] }
  0x14   : > { %v313_v37 = vpack.c.b16 %v312_v25, %v246_v19  ;;  %v440_v53 = vshll.u32 %v1416_v16, 16  ;;  %v500_v54 = vunpack.c.l.b16 %v492_v48  ;;  %v504_v4 = vrot.slane %v1416_v16, 2  ;;  %v1305_v19 = vld [vmem:[%s1586_s3 + $0x58] sm:$0xff]  ;;  %v1304_v25 = vld [vmem:[%s1586_s3 + $0x50] sm:$0xff] }
  0x15   : > { %1319 = vmatpush.bf16.msra.mxu2 %v1287_v14  ;;  %1322 = vmatpush.bf16.msra.mxu3 %v1285_v15  ;;  %v259_v35 = vshll.u32 %v1429_v31, 16  ;;  %v263_v36 = vshrl.u32 %v1429_v31, 16  ;;  %v257_v39 = vor.u32 %v256_v34, %v252_v26  ;;  %v429_v50 = vshrl.u32 %v365_v43, 16  ;;  %v1301_v21 = vld [vmem:[%s1586_s3 + $0x38] sm:$0xff]  ;;  %v1300_v28 = vld [vmem:[%s1586_s3 + $0x30] sm:$0xff] }
  0x16   : > { %298 = vmatpush.bf16.msra.mxu0 %v1287_v14  ;;  %343 = vmatpush.bf16.msra.mxu1 %v1285_v15  ;;  %v432_v51 = vshll.u32 %v365_v43, 16  ;;  %v439_v60 = vrot.slane %v437_v52, 1  ;;  %v442_v61 = vrot.slane %v440_v53, 2  ;;  %v501_v62 = vpack.c.b16 %v1317_v32, %v500_v54  ;;  %v1294_v15 = vld [vmem:[%s1586_s3] sm:$0xff]  ;;  %v1309_v26 = vld [vmem:[%s1586_s3 + $0x78] sm:$0xff]  ;;  %v1303_v32 = vld [vmem:[%s1586_s3 + $0x48] sm:$0xff] }
  0x17   : > { %v261_v41 = vrot.slane %v259_v35, 1  ;;  %v431_v58 = vrot.slane %v429_v50, 1  ;;  %v367_v1 = vrot.slane %v365_v43, 1  ;;  %v368_v2 = vrot.slane %v1429_v31, 1  ;;  %v1308_v33 = vld [vmem:[%s1586_s3 + $0x70] sm:$0xff]  ;;  %v1299_v35 = vld [vmem:[%s1586_s3 + $0x28] sm:$0xff] }
  0x18   : > { %v434_v59 = vrot.slane %v432_v51, 2  ;;  %v443_v0 = vor.u32 %v442_v61, %v439_v60  ;;  %v503_v3 = vrot.slane %v501_v62, 2  ;;  %vm502_vm5 = vcmask 1045504   ;;  %v1313_v52 = vld [vmem:[%s1586_s3 + $0x98] sm:$0xff] }
  0x19   : > { %1320 = vmatpush.bf16.msra.mxu2 %v1286_v29  ;;  %1323 = vmatpush.bf16.msra.mxu3 %v1284_v30  ;;  %v265_v44 = vor.u32 %v263_v36, %v261_v41  ;;  %v262_v45 = vsel %vm250_vm2, %v257_v39, %v261_v41  ;;  %v369_v6 = vsel %vm366_vm4, %v367_v1, %v368_v2  ;;  %v1302_v41 = vld [vmem:[%s1586_s3 + $0x40] sm:$0xff]  ;;  %vm643_vm8 = vcmask 523264  }
  0x1a   : > { %299 = vmatpush.bf16.msra.mxu0 %v1286_v29  ;;  %344 = vmatpush.bf16.msra.mxu1 %v1284_v30  ;;  %v435_v63 = vor.u32 %v434_v59, %v431_v58  ;;  %v505_v7 = vsel %vm502_vm5, %v503_v3, %v504_v4  ;;  %v1507_v30 = vld [vmem:[%s1585_s2] ss:$0 sm:$0xff]  ;;  %vm985_vm12 = vcmask 1041409   ;;  %vm987_vm14 = vcmask 1042434  }
  0x1b   : > { %vm989_vm15 = vcmask 1043459  }
  0x1c   : > { %1105 = vmatmul.msk.bf16.vlgmr.msra.gmra.mxu3 %vm281_vm1, %v313_v37  ;;  %1095 = vmatmul.msk.bf16.vlgmr.msra.gmra.mxu2 %vm281_vm1, %v265_v44  ;;  %v444_v5 = vsel %vm427_vm3, %v435_v63, %v443_v0  ;;  %v1298_v44 = vld [vmem:[%s1586_s3 + $0x20] sm:$0xff] }
  0x1d   : > { %399 = vmatpush.bf16.msrb.mxu2 %v392_v38  ;;  %474 = vmatpush.bf16.msrb.mxu3 %v467_v40 }
  0x1e   : > { %535 = vmatpush.bf16.msrb.mxu0 %v528_v42  ;;  %1104 = vmatmul.msk.bf16.vlgmr.msra.gmra.mxu1 %vm281_vm1, %v1315_v22  ;;  %v1307_v42 = vld [vmem:[%s1586_s3 + $0x68] sm:$0xff] }
  0x1f   : > { %1094 = vmatmul.msk.bf16.vlgmr.msra.gmra.mxu0 %vm281_vm1, %v262_v45  ;;  %654 = vmatpush.bf16.msrb.mxu1 %v1301_v21 }
  0x21   : > { %400 = vmatpush.bf16.msrb.mxu2 %v1289_v46  ;;  %475 = vmatpush.bf16.msrb.mxu3 %v1291_v47  ;;  %v1306_v47 = vld [vmem:[%s1586_s3 + $0x60] sm:$0xff] }
  0x22   : > { %536 = vmatpush.bf16.msrb.mxu0 %v1293_v49 }
  0x23   : > { %655 = vmatpush.bf16.msrb.mxu1 %v1300_v28 }
  0x25   : > { %401 = vmatpush.bf16.msrb.mxu2 %v1288_v55  ;;  %476 = vmatpush.bf16.msrb.mxu3 %v1290_v56 }
  0x26   : > { %537 = vmatpush.bf16.msrb.mxu0 %v1292_v57  ;;  %v1312_v57 = vld [vmem:[%s1586_s3 + $0x90] sm:$0xff] }
  0x27   : > { %656 = vmatpush.bf16.msrb.mxu1 %v1299_v35 }
  0x29   : > { %702 = vmatpush.bf16.msra.mxu2 %v1297_v8  ;;  %762 = vmatpush.bf16.msra.mxu3 %v1305_v19 }
  0x2a   : > { %829 = vmatpush.bf16.msra.mxu0 %v1309_v26 }
  0x2b   : > { %657 = vmatpush.bf16.msrb.mxu1 %v1298_v44 }
  0x2c   : > { %1134 = vmatmul.msk.bf16.vlgmr.msrb.gmra.mxu3 %vm281_vm1, %v444_v5  ;;  %1119 = vmatmul.msk.bf16.vlgmr.msrb.gmra.mxu2 %vm281_vm1, %v369_v6 }
  0x2d   : > { %703 = vmatpush.bf16.msra.mxu2 %v1296_v10  ;;  %763 = vmatpush.bf16.msra.mxu3 %v1304_v25 }
  0x2e   : > { %830 = vmatpush.bf16.msra.mxu0 %v1308_v33 }
  0x2f   : > { %1149 = vmatmul.msk.bf16.vlgmr.msrb.gmra.mxu0 %vm281_vm1, %v505_v7  ;;  %892 = vmatpush.bf16.msra.mxu1 %v1313_v52 }
  0x31   : > { %704 = vmatpush.bf16.msra.mxu2 %v1295_v13  ;;  %764 = vmatpush.bf16.msra.mxu3 %v1303_v32 }
  0x32   : > { %831 = vmatpush.bf16.msra.mxu0 %v1307_v42 }
  0x33   : > { %893 = vmatpush.bf16.msra.mxu1 %v1312_v57 }
  0x35   : > { %705 = vmatpush.bf16.msra.mxu2 %v1294_v15  ;;  %765 = vmatpush.bf16.msra.mxu3 %v1302_v41 }
  0x36   : > { %832 = vmatpush.bf16.msra.mxu0 %v1306_v47 }
  0x3c   : > { %1135 = vmatmul.msk.bf16.gmra.mxu3 %vm281_vm1, %v443_v0  ;;  %1120 = vmatmul.msk.bf16.gmra.mxu2 %vm281_vm1, %v368_v2 }
  0x3f   : > { %1150 = vmatmul.msk.bf16.gmra.mxu0 %vm281_vm1, %v504_v4  ;;  %vm991_vm1 = vcmask 1044484  }
  0x9b   : > { %v346_v18 = vpop.f32.mrf.mxu1 }
  0x9c   : > { %v301_v9 = vpop.f32.mrf.mxu0 }
  0x9d   : > { %v347_v22 = vadd.f32 %v346_v18, %v301_v9 }
  0x9f   : > { %v351_v11 = vpop.f32.mrf.mxu3  ;;  %v306_v12 = vpop.f32.mrf.mxu2 }
  0xa0   : > { %v352_v49 = vadd.f32 %v351_v11, %v306_v12 }
  0xa3   : > { %v348_v31 = vpop.f32.mrf.mxu1 }
  0xa4   : > { %v303_v14 = vpop.f32.mrf.mxu0 }
  0xa5   : > { %v349_v36 = vadd.f32 %v348_v31, %v303_v14  ;;  %v1311_v14 = vld [vmem:[%s1586_s3 + $0x88] sm:$0xff] }
  0xa6   : > { %894 = vmatpush.bf16.msra.mxu1 %v1311_v14 }
  0xa7   : > { %v1485_v16 = vpop.f32.mrf.mxu3  ;;  %v1487_v17 = vpop.f32.mrf.mxu2 }
  0xa8   : > { %v354_v2 = vadd.f32 %v1485_v16, %v1487_v17  ;;  %v1310_v17 = vld [vmem:[%s1586_s3 + $0x80] sm:$0xff] }
  0xaa   : > { %895 = vmatpush.bf16.msra.mxu1 %v1310_v17 }
  0xac   : > { %v539_v20 = vpop.f32.mrf.mxu0 }
  0xaf   : > { %v478_v23 = vpop.f32.mrf.mxu3  ;;  %v403_v24 = vpop.f32.mrf.mxu2 }
  0xb0   : > { %v413_v27 = vadd.f32 %v403_v24, %v347_v22 }
  0xb2   : > { %v488_v29 = vadd.f32 %v478_v23, %v413_v27 }
  0xb4   : > { %v549_v34 = vadd.f32 %v539_v20, %v488_v29  ;;  %v541_v39 = vpop.f32.mrf.mxu0 }
  0xb6   : > { %v557_v37 = vadd.f32 %v1507_v30, %v549_v34 }
  0xb7   : > { %v480_v38 = vpop.f32.mrf.mxu3  ;;  %v405_v40 = vpop.f32.mrf.mxu2 }
  0xb8   : > { %v414_v43 = vadd.f32 %v405_v40, %v349_v36  ;;  %v565_v45 = vmul.f32 0.01, %v557_v37  ;;  %vm561_vm6 = vcmp.gt.f32.partialorder %v557_v37, 0.0 }
  0xba   : > { %v489_v46 = vadd.f32 %v480_v38, %v414_v43  ;;  %v569_v50 = vsel %vm561_vm6, %v557_v37, %v565_v45 }
  0xbb   : > { %v573_v58 = vpack.c.bf16 %v569_v50, %v569_v50 }
  0xbc   : > { %v550_v48 = vadd.f32 %v541_v39, %v489_v46  ;;  %v544_v59 = vpop.f32.mrf.mxu0 }
  0xbd   : > { %v598_v0 = vunpack.c.l.b16 %v573_v58 }
  0xbe   : > { %v558_v51 = vadd.f32 %v1507_v30, %v550_v48 }
  0xbf   : > { %v408_v53 = vpop.f32.mrf.mxu2  ;;  %v483_v54 = vpop.f32.mrf.mxu3 }
  0xc0   : > { %vm562_vm7 = vcmp.gt.f32.partialorder %v558_v51, 0.0  ;;  %v566_v55 = vmul.f32 0.01, %v558_v51  ;;  %v415_v56 = vadd.f32 %v408_v53, %v352_v49 }
  0xc2   : > { %v570_v60 = vsel %vm562_vm7, %v558_v51, %v566_v55  ;;  %v490_v61 = vadd.f32 %v483_v54, %v415_v56 }
  0xc3   : > { %v574_v62 = vpack.c.bf16 %v570_v60, %v570_v60 }
  0xc4   : > { %v551_v63 = vadd.f32 %v544_v59, %v490_v61  ;;  %v546_v10 = vpop.f32.mrf.mxu0 }
  0xc5   : > { %v599_v1 = vunpack.c.l.b16 %v574_v62 }
  0xc6   : > { %v559_v3 = vadd.f32 %v1507_v30, %v551_v63 }
  0xc7   : > { %v602_v4 = vpack.c.b16 %v599_v1, %v598_v0  ;;  %v410_v5 = vpop.f32.mrf.mxu2  ;;  %v485_v8 = vpop.f32.mrf.mxu3  ;;  %v1335_v1 = vld [vmem:[%s1587_s4] ss:$0 sm:$0xff] }
  0xc8   : > { %v567_v6 = vmul.f32 0.01, %v559_v3  ;;  %v416_v7 = vadd.f32 %v410_v5, %v354_v2  ;;  %vm563_vm9 = vcmp.gt.f32.partialorder %v559_v3, 0.0 }
  0xc9   : > { %1193 = vmatmul.msk.bf16.vlgmr.msra.gmra.mxu2 %vm643_vm8, %v602_v4  ;;  %v607_v19 = vshll.u32 %v602_v4, 16  ;;  %v605_v22 = vshrl.u32 %v602_v4, 16  ;;  %v725_v27 = vrot.slane %v602_v4, 1  ;;  %v855_v44 = vrot.slane %v602_v4, 2 }
  0xca   : > { %v491_v9 = vadd.f32 %v485_v8, %v416_v7  ;;  %v571_v12 = vsel %vm563_vm9, %v559_v3, %v567_v6 }
  0xcb   : > { %v575_v15 = vpack.c.bf16 %v571_v12, %v571_v12  ;;  %v609_v24 = vrot.slane %v607_v19, 1  ;;  %v788_v28 = vrot.slane %v605_v22, 1  ;;  %v789_v32 = vrot.slane %v607_v19, 2 }
  0xcc   : > { %v552_v11 = vadd.f32 %v546_v10, %v491_v9 }
  0xcd   : > { %v600_v21 = vunpack.c.l.b16 %v575_v15  ;;  %v610_v33 = vor.u32 %v609_v24, %v605_v22  ;;  %v790_v39 = vor.u32 %v789_v32, %v788_v28 }
  0xce   : > { %v560_v13 = vadd.f32 %v1507_v30, %v552_v11 }
  0xcf   : > { %v668_v26 = vpack.c.b16 %v600_v21, %v600_v21 }
  0xd0   : > { %vm564_vm10 = vcmp.gt.f32.partialorder %v560_v13, 0.0  ;;  %v568_v16 = vmul.f32 0.01, %v560_v13 }
  0xd2   : > { %v572_v18 = vsel %vm564_vm10, %v560_v13, %v568_v16 }
  0xd3   : > { %v576_v20 = vpack.c.bf16 %v572_v18, %v572_v18 }
  0xd5   : > { %v601_v23 = vunpack.c.l.b16 %v576_v20 }
  0xd7   : > { %v603_v25 = vpack.c.b16 %v601_v23, %v600_v21 }
  0xd9   : > { %1194 = vmatmul.msk.bf16.gmra.mxu2 %vm643_vm8, %v668_v26  ;;  %v726_v29 = vrot.slane %v603_v25, 1  ;;  %v612_v30 = vshll.u32 %v603_v25, 16  ;;  %v616_v31 = vshrl.u32 %v603_v25, 16  ;;  %v856_v43 = vrot.slane %v603_v25, 2 }
  0xdb   : > { %v727_v34 = vsel %vm366_vm4, %v725_v27, %v726_v29  ;;  %v614_v35 = vrot.slane %v612_v30, 1  ;;  %v792_v36 = vrot.slane %v612_v30, 2  ;;  %v791_v37 = vrot.slane %v616_v31, 1 }
  0xdc   : > { %1219 = vmatmul.msk.bf16.vlgmr.msra.gmra.mxu3 %vm643_vm8, %v727_v34  ;;  %v857_v45 = vsel %vm502_vm5, %v855_v44, %v856_v43  ;;  %v1344_v30 = vmov 0.0   ;;  %vm997_vm4 = vcmask 1047559  }
  0xdd   : > { %v615_v38 = vsel %vm250_vm2, %v610_v33, %v614_v35  ;;  %v793_v40 = vor.u32 %v792_v36, %v791_v37  ;;  %v618_v42 = vor.u32 %v616_v31, %v614_v35  ;;  %v932_v31 = vrot.slane %v1344_v30, 4 }
  0xde   : > { %1175 = vmatmul.msk.bf16.vlgmr.msrb.gmra.mxu1 %vm643_vm8, %v615_v38  ;;  %v1279_v37 = vrot.slane %v1344_v30, 9  ;;  %vm993_vm2 = vcmask 1045509  }
  0xdf   : > { %v794_v41 = vsel %vm427_vm3, %v790_v39, %v793_v40  ;;  %vm995_vm3 = vcmask 1046534  }
  0xe0   : > { %1245 = vmatmul.msk.bf16.vlgmr.msra.gmra.mxu0 %vm643_vm8, %v794_v41 }
  0xec   : > { %1220 = vmatmul.msk.bf16.gmra.mxu3 %vm643_vm8, %v726_v29 }
  0xee   : > { %1176 = vmatmul.msk.bf16.gmra.mxu1 %vm643_vm8, %v618_v42 }
  0xf0   : > { %1246 = vmatmul.msk.bf16.gmra.mxu0 %vm643_vm8, %v793_v40  ;;  %v1280_v40 = vrot.slane %v932_v31, 9 }
  0xfe   : > { %1271 = vmatmul.msk.bf16.vlgmr.msra.gmra.mxu1 %vm643_vm8, %v857_v45 }
 0x10e   : > { %1272 = vmatmul.msk.bf16.gmra.mxu1 %vm643_vm8, %v856_v43 }
 0x14c   : > { %v707_v46 = vpop.f32.mrf.mxu2 }
 0x154   : > { %v709_v47 = vpop.f32.mrf.mxu2 }
 0x15b   : > { %v659_v48 = vpop.f32.mrf.mxu1 }
 0x15c   : > { %v712_v49 = vpop.f32.mrf.mxu2  ;;  %v708_v60 = vadd.f32 %v707_v46, %v659_v48 }
 0x15d   : > { %v834_v50 = vpop.f32.mrf.mxu0 }
 0x15f   : > { %v767_v51 = vpop.f32.mrf.mxu3 }
 0x160   : > { %v776_v62 = vadd.f32 %v767_v51, %v708_v60 }
 0x162   : > { %v843_v0 = vadd.f32 %v834_v50, %v776_v62 }
 0x163   : > { %v661_v52 = vpop.f32.mrf.mxu1 }
 0x164   : > { %v714_v53 = vpop.f32.mrf.mxu2  ;;  %v710_v3 = vadd.f32 %v709_v47, %v661_v52  ;;  %v968_v52 = vmax.f32 %v932_v31, %v1280_v40 }
 0x165   : > { %v836_v54 = vpop.f32.mrf.mxu0 }
 0x167   : > { %v769_v55 = vpop.f32.mrf.mxu3 }
 0x168   : > { %v777_v5 = vadd.f32 %v769_v55, %v710_v3 }
 0x16a   : > { %v844_v9 = vadd.f32 %v836_v54, %v777_v5 }
 0x16b   : > { %v664_v56 = vpop.f32.mrf.mxu1 }
 0x16c   : > { %v713_v13 = vadd.f32 %v712_v49, %v664_v56  ;;  %v967_v49 = vmax.f32 %v1279_v37, 0.0 }
 0x16d   : > { %v839_v57 = vpop.f32.mrf.mxu0 }
 0x16e   : > { %v1006_v60 = vperm.slane %v967_v49, 2 }
 0x16f   : > { %v772_v58 = vpop.f32.mrf.mxu3 }
 0x170   : > { %v778_v17 = vadd.f32 %v772_v58, %v713_v13 }
 0x172   : > { %v845_v24 = vadd.f32 %v839_v57, %v778_v17 }
 0x173   : > { %v666_v59 = vpop.f32.mrf.mxu1 }
 0x175   : > { %v841_v61 = vpop.f32.mrf.mxu0 }
 0x176   : > { %v1007_v61 = vperm.slane %v968_v52, 2 }
 0x177   : > { %v774_v63 = vpop.f32.mrf.mxu3 }
 0x178   : > { %v983_v63 = vperm.slane %v967_v49, 0 }
 0x17b   : > { %v897_v2 = vpop.f32.mrf.mxu1 }
 0x17c   : > { %v906_v4 = vadd.f32 %v897_v2, %v843_v0  ;;  %v984_v0 = vperm.slane %v968_v52, 0 }
 0x17e   : > { %v913_v6 = vadd.f32 %v1335_v1, %v906_v4 }
 0x180   : > { %vm916_vm11 = vcmp.gt.f32.partialorder %v913_v6, 0.0  ;;  %v919_v7 = vmul.f32 0.01, %v913_v6 }
 0x182   : > { %v922_v8 = vsel %vm916_vm11, %v913_v6, %v919_v7 }
 0x183   : > { %v929_v10 = vrot.slane %v922_v8, 4  ;;  %v1273_v11 = vrot.slane %v922_v8, 9  ;;  %v899_v12 = vpop.f32.mrf.mxu1 }
 0x184   : > { %v907_v14 = vadd.f32 %v899_v12, %v844_v9 }
 0x185   : > { %v1274_v15 = vrot.slane %v929_v10, 9  ;;  %v961_v16 = vmax.f32 %v922_v8, %v1273_v11 }
 0x186   : > { %v914_v18 = vadd.f32 %v1335_v1, %v907_v14 }
 0x187   : > { %v962_v19 = vmax.f32 %v929_v10, %v1274_v15  ;;  %v977_v21 = vperm.slane %v961_v16, 0  ;;  %v1000_v44 = vperm.slane %v961_v16, 2 }
 0x188   : > { %vm917_vm13 = vcmp.gt.f32.partialorder %v914_v18, 0.0  ;;  %v920_v20 = vmul.f32 0.01, %v914_v18 }
 0x189   : > { %v978_v22 = vperm.slane %v962_v19, 0  ;;  %v1001_v38 = vperm.slane %v962_v19, 2 }
 0x18a   : > { %v923_v23 = vsel %vm917_vm13, %v914_v18, %v920_v20 }
 0x18b   : > { %v986_v25 = vsel %vm985_vm12, %v978_v22, %v977_v21  ;;  %v930_v26 = vrot.slane %v923_v23, 4  ;;  %v1275_v27 = vrot.slane %v923_v23, 9  ;;  %v902_v28 = vpop.f32.mrf.mxu1  ;;  %v1008_v53 = vsel %vm985_vm12, %v1001_v38, %v1000_v44 }
 0x18c   : > { %v908_v29 = vadd.f32 %v902_v28, %v845_v24 }
 0x18d   : > { %v1276_v32 = vrot.slane %v930_v26, 9  ;;  %v963_v33 = vmax.f32 %v923_v23, %v1275_v27 }
 0x18e   : > { %v915_v34 = vadd.f32 %v1335_v1, %v908_v29 }
 0x18f   : > { %v964_v35 = vmax.f32 %v930_v26, %v1276_v32  ;;  %v979_v36 = vperm.slane %v963_v33, 0  ;;  %v1002_v42 = vperm.slane %v963_v33, 2 }
 0x190   : > { %vm918_vm0 = vcmp.gt.f32.partialorder %v915_v34, 0.0  ;;  %v921_v39 = vmul.f32 0.01, %v915_v34 }
 0x191   : > { %v980_v41 = vperm.slane %v964_v35, 0  ;;  %v988_v43 = vsel %vm987_vm14, %v979_v36, %v986_v25  ;;  %v1003_v51 = vperm.slane %v964_v35, 2  ;;  %v1009_v56 = vsel %vm987_vm14, %v1002_v42, %v1008_v53 }
 0x192   : > { %v924_v45 = vsel %vm918_vm0, %v915_v34, %v921_v39 }
 0x193   : > { %v931_v46 = vrot.slane %v924_v45, 4  ;;  %v1277_v47 = vrot.slane %v924_v45, 9  ;;  %v904_v48 = vpop.f32.mrf.mxu1  ;;  %v990_v50 = vsel %vm989_vm15, %v980_v41, %v988_v43  ;;  %v1010_v62 = vsel %vm989_vm15, %v1003_v51, %v1009_v56 }
 0x195   : > { %v1278_v54 = vrot.slane %v931_v46, 9  ;;  %v965_v55 = vmax.f32 %v924_v45, %v1277_v47 }
 0x197   : > { %v966_v57 = vmax.f32 %v931_v46, %v1278_v54  ;;  %v981_v58 = vperm.slane %v965_v55, 0  ;;  %v1004_v59 = vperm.slane %v965_v55, 2 }
 0x199   : > { %v1005_v1 = vperm.slane %v966_v57, 2  ;;  %v1011_v2 = vsel %vm991_vm1, %v1004_v59, %v1010_v62  ;;  %v982_v3 = vperm.slane %v966_v57, 0  ;;  %v992_v4 = vsel %vm991_vm1, %v981_v58, %v990_v50 }
 0x19b   : > { %v1012_v5 = vsel %vm993_vm2, %v1005_v1, %v1011_v2  ;;  %v994_v6 = vsel %vm993_vm2, %v982_v3, %v992_v4 }
 0x19c   : > { %v1013_v7 = vsel %vm995_vm3, %v1006_v60, %v1012_v5  ;;  %v996_v8 = vsel %vm995_vm3, %v983_v63, %v994_v6 }
 0x19d   : > { %v1014_v9 = vsel %vm997_vm4, %v1007_v61, %v1013_v7  ;;  %v998_v10 = vsel %vm997_vm4, %v984_v0, %v996_v8 }
 0x19e   : > { %1015 = vrot.lane.b32.xlu0 %v1014_v9, %s1345_s29 }
 0x210   : > { %v1016_v11 = vpop.permute.xlu0 %1015 }
 0x211   : > { %v1018_v12 = vsel %vm643_vm8, %v998_v10, %v1016_v11 }
 0x212   : > { %1019 = vst [vmem:[%s222_s8] sm:$0xff] %v1018_v12 }
 0x213 PF: > { %s15_s18 = sadd.s32 1, %s1342_s18  }
 0x214   : > { %p12_p4 = scmp.ge.s32.totalorder %s15_s18, 4  }
 0x216   :  { %14 = sbr.rel (!%p12_p4) target bundleno = 1 (0x1), region = 78 }

</bundles_post_ra>
